<compile_context>
chip_gen: v6e
topology: v6e:2x2x1
jax: 0.10.0
libtpu: 0.0.40
codegen_flags: <defaults>
</compile_context>

<pallas_src>
import numpy as np
import jax
import jax.numpy as jnp
from jax.experimental import pallas as pl
from jax.experimental.pallas import tpu as pltpu

BN_EPS = 1e-5          # torch.nn.BatchNorm2d default eps
LEAKY_SLOPE = 0.2      # torch.nn.LeakyReLU(negative_slope=0.2)


def conv_block_forward(x_nchw, weight_oihw, gamma, beta):
    N, Cin, H, W = x_nchw.shape
    Cout, _, KH, KW = weight_oihw.shape
    Ho, Wo = H - KH + 1, W - KW + 1
    KK = KH * KW
    HW = H * W
    m_true = float(N * Ho * Wo)                 # BN divides by the TRUE number of valid positions

    # ----------------------------- tiling decisions -------------------------------------------
    HWp = ((HW + 127) // 128) * 128             # per-image output lane span, 128-aligned
    max_shift = (KH - 1) * W + (KW - 1)
    # Per-image input lane span: HWp output lanes + halo so every shifted slice stays in-bounds.
    HWin = ((HWp + max_shift + 127) // 128) * 128

    # Batch packing: largest divisor of N keeping <= ~2048 output lanes per block
    # (>=512-wide tiles already hit the HBM roofline; 2048 keeps VMEM small even on v7x).
    NB = 1
    for cand in range(1, N + 1):
        if N % cand == 0 and cand * HWp <= 2048:
            NB = cand
    T = N // NB                                 # number of batch blocks (grid axis 2)

    C_B = Cout if Cout <= 256 else 256          # output-channel block (parallel grid axis)
    assert Cout % C_B == 0
    CT = Cout // C_B

    # ----------------------------- fused kernel -----------------------------------------------
    def kernel(w_ref, x_ref, mask_ref, g_ref, b_ref, o_ref,
               sum_s, ss_s, scale_s, shift_s):
        p = pl.program_id(1)                    # phase: 0 = batch statistics, 1 = normalize+store
        t = pl.program_id(2)                    # batch-block index
        nt = pl.num_programs(2)

        xb = x_ref[...]                         # (1, NB, Cin, HWin) bf16, VMEM resident
        m = mask_ref[...]                       # (1, HWp): 1.0 where (h < Ho) & (w < Wo)

        # Conv tiles (C_B, HWp) f32 per image: KH*KW shifted bf16 MXU matmuls, f32 accumulation.
        # Shifted windows are static lane slices of the resident slab (no im2col, x read once
        # per phase).
        ys = []
        for n in range(NB):
            xn = xb[0, n]                       # (Cin, HWin)
            y = jnp.zeros((C_B, HWp), jnp.float32)
            for kh in range(KH):
                for kw in range(KW):
                    s = kh * W + kw
                    y = y + jnp.dot(w_ref[kh * KW + kw], xn[:, s:s + HWp],
                                    preferred_element_type=jnp.float32)
            ys.append(y)

        # ---- phase 0: per-channel sum / sum-of-squares over VALID conv outputs ----
        @pl.when((p == 0) & (t == 0))
        def _init():
            sum_s[...] = jnp.zeros_like(sum_s)
            ss_s[...] = jnp.zeros_like(ss_s)

        @pl.when(p == 0)
        def _accumulate():
            s_acc = jnp.zeros((C_B, 1), jnp.float32)
            q_acc = jnp.zeros((C_B, 1), jnp.float32)
            for y in ys:
                ym = y * m
                s_acc = s_acc + jnp.sum(ym, axis=1, keepdims=True)
                q_acc = q_acc + jnp.sum(ym * y, axis=1, keepdims=True)
            sum_s[...] += s_acc
            ss_s[...] += q_acc

        @pl.when((p == 0) & (t == nt - 1))
        def _finalize_stats():
            mean = sum_s[...] * (1.0 / m_true)
            var = ss_s[...] * (1.0 / m_true) - mean * mean        # biased var (BN train mode)
            inv = jax.lax.rsqrt(var + BN_EPS)
            sc = g_ref[...] * inv                                  # fold gamma into scale
            scale_s[...] = sc
            shift_s[...] = b_ref[...] - mean * sc                  # fold beta/mean into shift

        # ---- phase 1: single FMA + LeakyReLU per element, lane-dense stores ----
        @pl.when(p == 1)
        def _store():
            sc = scale_s[...]
            sh = shift_s[...]
            for n in range(NB):
                z = ys[n] * sc + sh
                z = jnp.maximum(z, LEAKY_SLOPE * z)                # LeakyReLU(0.2), slope < 1
                o_ref[n, :, :] = z.astype(o_ref.dtype)

    # ----------------------------- one-pass layout prep (no transpose, no patch duplication) ---
    x_flat = x_nchw.astype(jnp.bfloat16).reshape(N, Cin, HW)
    x_pad = jnp.pad(x_flat, ((0, 0), (0, 0), (0, HWin - HW)))      # per-image zero halo
    x_blk = x_pad.reshape(T, NB, Cin, HWin)                        # free split of batch axis

    w_r = weight_oihw.astype(jnp.bfloat16).transpose(2, 3, 0, 1).reshape(KK, Cout, Cin)
    g = gamma.reshape(Cout, 1).astype(jnp.float32)
    b = beta.reshape(Cout, 1).astype(jnp.float32)

    # Validity mask for one image (same for every image / batch block).
    idx = np.arange(HWp)
    mask1 = ((idx < HW) & ((idx // W) < Ho) & ((idx % W) < Wo)).astype(np.float32)
    mask = jnp.asarray(mask1[None, :])                             # (1, HWp)

    out = pl.pallas_call(
        kernel,
        out_shape=jax.ShapeDtypeStruct((N, Cout, HWp), jnp.float32),
        grid=(CT, 2, T),
        in_specs=[
            pl.BlockSpec((KK, C_B, Cin), lambda c, p, t: (0, c, 0)),
            pl.BlockSpec((1, NB, Cin, HWin), lambda c, p, t: (t, 0, 0, 0)),
            pl.BlockSpec((1, HWp), lambda c, p, t: (0, 0)),
            pl.BlockSpec((C_B, 1), lambda c, p, t: (c, 0)),
            pl.BlockSpec((C_B, 1), lambda c, p, t: (c, 0)),
        ],
        # During phase 0 the output block index stays at (0, c): no garbage writebacks; every
        # output block is written exactly once, during phase 1.
        out_specs=pl.BlockSpec((NB, C_B, HWp), lambda c, p, t: (t * p, c, 0)),
        scratch_shapes=[pltpu.VMEM((C_B, 1), jnp.float32)] * 4,
        compiler_params=pltpu.CompilerParams(
            dimension_semantics=("parallel", "arbitrary", "arbitrary"),
            vmem_limit_bytes=32 * 1024 * 1024,
        ),
    )(w_r, x_blk, mask, g, b)

    # Layout is already NCHW-major: only crop the spatial padding (no transpose pass).
    return out[:, :, :HW].reshape(N, Cout, H, W)[:, :, :Ho, :Wo]


def reference_forward(x, w, gamma, beta, conv_dtype=jnp.float32):
    """Plain-JAX reference: Conv2d(valid, no bias) -> BatchNorm2d(train mode) -> LeakyReLU(0.2)."""
    y = jax.lax.conv_general_dilated(
        x.astype(conv_dtype), w.astype(conv_dtype),
        window_strides=(1, 1), padding="VALID",
        dimension_numbers=("NCHW", "OIHW", "NCHW"),
        preferred_element_type=jnp.float32)
    mean = jnp.mean(y, axis=(0, 2, 3), keepdims=True)
    var = jnp.mean((y - mean) ** 2, axis=(0, 2, 3), keepdims=True)
    z = (y - mean) * jax.lax.rsqrt(var + BN_EPS)
    z = z * gamma.reshape(1, -1, 1, 1) + beta.reshape(1, -1, 1, 1)
    return jnp.where(z >= 0, z, LEAKY_SLOPE * z)


if __name__ == "__main__":
    # ConvBlock(in_features=4, out_features=8) at a small, module-consistent shape.
    N, Cin, H, W = 2, 4, 16, 16
    Cout, KH, KW = 8, 3, 3

    key = jax.random.PRNGKey(0)
    kx, kwt = jax.random.split(key)
    x = jax.random.normal(kx, (N, Cin, H, W), dtype=jnp.float32)
    # Conv2d weight (bias=False); deterministic stand-in for kaiming_uniform_ init.
    weight = 0.1 * jax.random.normal(kwt, (Cout, Cin, KH, KW), dtype=jnp.float32)
    gamma = jnp.ones((Cout,), jnp.float32)   # BatchNorm2d default weight init
    beta = jnp.zeros((Cout,), jnp.float32)   # BatchNorm2d default bias init
    # TODO(synk): running_mean/running_var buffer updates (training-time side effect) are not
    #             modeled; they do not affect the train-mode forward output.

    fwd = jax.jit(conv_block_forward)
    out = jax.block_until_ready(fwd(x, weight, gamma, beta))
    assert out.shape == (N, Cout, H - KH + 1, W - KW + 1)

    # Tight check: reference with the same bf16-rounded conv inputs (f32 accumulation + f32
    # BN/LeakyReLU epilogue) -- verifies the kernel logic itself.
    ref_bf16 = jax.block_until_ready(
        reference_forward(x, weight, gamma, beta, conv_dtype=jnp.bfloat16))
    np.testing.assert_allclose(np.asarray(out), np.asarray(ref_bf16), rtol=5e-3, atol=5e-3)

    # Semantics check vs. the full-f32 reference: bf16 matmul inputs are an intentional MXU/DMA
    # optimization; the difference is bounded by bf16 input rounding.
    ref_f32 = jax.block_until_ready(
        reference_forward(x, weight, gamma, beta, conv_dtype=jnp.float32))
    np.testing.assert_allclose(np.asarray(out), np.asarray(ref_f32), rtol=3e-2, atol=3e-2)

    print("KERNEL_OK")
</pallas_src>

<mosaic_0001>
module attributes {stable_mosaic.version = 11 : i64} {
  func.func @kernel(%arg0: i32, %arg1: i32, %arg2: i32, %arg3: memref<9x8x4xbf16, #tpu.memory_space<vmem>>, %arg4: memref<1x2x4x384xbf16, #tpu.memory_space<vmem>>, %arg5: memref<1x256xf32, #tpu.memory_space<vmem>>, %arg6: memref<8x1xf32, #tpu.memory_space<vmem>>, %arg7: memref<8x1xf32, #tpu.memory_space<vmem>>, %arg8: memref<2x8x256xf32, #tpu.memory_space<vmem>>, %arg9: memref<8x1xf32, #tpu.memory_space<vmem>>, %arg10: memref<8x1xf32, #tpu.memory_space<vmem>>, %arg11: memref<8x1xf32, #tpu.memory_space<vmem>>, %arg12: memref<8x1xf32, #tpu.memory_space<vmem>>) attributes {dimension_semantics = [#tpu.dimension_semantics<parallel>, #tpu.dimension_semantics<arbitrary>, #tpu.dimension_semantics<arbitrary>], iteration_bounds = array<i64: 1, 2, 1>, scalar_prefetch = 0 : i64, scratch_operands = 4 : i64, tpu.core_type = #tpu.core_type<tc>, window_params = [{transform_indices = @transform_0, window_bounds = array<i64: 9, 8, 4>}, {transform_indices = @transform_1, window_bounds = array<i64: 1, 2, 4, 384>}, {pipeline_mode = #tpu.pipeline_mode<synchronous>, transform_indices = @transform_2, window_bounds = array<i64: 1, 256>}, {transform_indices = @transform_3, window_bounds = array<i64: 8, 1>}, {transform_indices = @transform_4, window_bounds = array<i64: 8, 1>}, {transform_indices = @transform_5, window_bounds = array<i64: 2, 8, 256>}]} {
    %c0 = arith.constant 0 : index
    %c0_0 = arith.constant 0 : index
    %c0_1 = arith.constant 0 : index
    %c0_2 = arith.constant 0 : index
    %0 = vector.load %arg4[%c0, %c0_0, %c0_1, %c0_2] : memref<1x2x4x384xbf16, #tpu.memory_space<vmem>>, vector<1x2x4x384xbf16>
    %c0_3 = arith.constant 0 : index
    %c0_4 = arith.constant 0 : index
    %1 = vector.load %arg5[%c0_3, %c0_4] : memref<1x256xf32, #tpu.memory_space<vmem>>, vector<1x256xf32>
    %2 = vector.extract_strided_slice %0 {offsets = [0, 0, 0, 0], sizes = [1, 1, 4, 384], strides = [1, 1, 1, 1]} : vector<1x2x4x384xbf16> to vector<1x1x4x384xbf16>
    %3 = vector.shape_cast %2 : vector<1x1x4x384xbf16> to vector<4x384xbf16>
    %cst = arith.constant 0.000000e+00 : f32
    %4 = vector.broadcast %cst : f32 to vector<8x256xf32>
    %c0_5 = arith.constant 0 : index
    %c0_6 = arith.constant 0 : index
    %c0_7 = arith.constant 0 : index
    %5 = vector.load %arg3[%c0_5, %c0_6, %c0_7] : memref<9x8x4xbf16, #tpu.memory_space<vmem>>, vector<1x8x4xbf16>
    %6 = vector.shape_cast %5 : vector<1x8x4xbf16> to vector<8x4xbf16>
    %7 = vector.extract_strided_slice %3 {offsets = [0, 0], sizes = [4, 256], strides = [1, 1]} : vector<4x384xbf16> to vector<4x256xbf16>
    %cst_8 = arith.constant dense<0.000000e+00> : vector<8x256xf32>
    %8 = tpu.matmul %6, %7, %cst_8 {dimension_numbers = #tpu.dot_dimension_numbers<[1], [0], [0], [1], [0, 0, 1, 1], [], []>} : vector<8x4xbf16>, vector<4x256xbf16>, vector<8x256xf32> -> vector<8x256xf32>
    %9 = arith.addf %4, %8 : vector<8x256xf32>
    %c1 = arith.constant 1 : index
    %c0_9 = arith.constant 0 : index
    %c0_10 = arith.constant 0 : index
    %10 = vector.load %arg3[%c1, %c0_9, %c0_10] : memref<9x8x4xbf16, #tpu.memory_space<vmem>>, vector<1x8x4xbf16>
    %11 = vector.shape_cast %10 : vector<1x8x4xbf16> to vector<8x4xbf16>
    %12 = vector.extract_strided_slice %3 {offsets = [0, 1], sizes = [4, 256], strides = [1, 1]} : vector<4x384xbf16> to vector<4x256xbf16>
    %cst_11 = arith.constant dense<0.000000e+00> : vector<8x256xf32>
    %13 = tpu.matmul %11, %12, %cst_11 {dimension_numbers = #tpu.dot_dimension_numbers<[1], [0], [0], [1], [0, 0, 1, 1], [], []>} : vector<8x4xbf16>, vector<4x256xbf16>, vector<8x256xf32> -> vector<8x256xf32>
    %14 = arith.addf %9, %13 : vector<8x256xf32>
    %c2 = arith.constant 2 : index
    %c0_12 = arith.constant 0 : index
    %c0_13 = arith.constant 0 : index
    %15 = vector.load %arg3[%c2, %c0_12, %c0_13] : memref<9x8x4xbf16, #tpu.memory_space<vmem>>, vector<1x8x4xbf16>
    %16 = vector.shape_cast %15 : vector<1x8x4xbf16> to vector<8x4xbf16>
    %17 = vector.extract_strided_slice %3 {offsets = [0, 2], sizes = [4, 256], strides = [1, 1]} : vector<4x384xbf16> to vector<4x256xbf16>
    %cst_14 = arith.constant dense<0.000000e+00> : vector<8x256xf32>
    %18 = tpu.matmul %16, %17, %cst_14 {dimension_numbers = #tpu.dot_dimension_numbers<[1], [0], [0], [1], [0, 0, 1, 1], [], []>} : vector<8x4xbf16>, vector<4x256xbf16>, vector<8x256xf32> -> vector<8x256xf32>
    %19 = arith.addf %14, %18 : vector<8x256xf32>
    %c3 = arith.constant 3 : index
    %c0_15 = arith.constant 0 : index
    %c0_16 = arith.constant 0 : index
    %20 = vector.load %arg3[%c3, %c0_15, %c0_16] : memref<9x8x4xbf16, #tpu.memory_space<vmem>>, vector<1x8x4xbf16>
    %21 = vector.shape_cast %20 : vector<1x8x4xbf16> to vector<8x4xbf16>
    %22 = vector.extract_strided_slice %3 {offsets = [0, 16], sizes = [4, 256], strides = [1, 1]} : vector<4x384xbf16> to vector<4x256xbf16>
    %cst_17 = arith.constant dense<0.000000e+00> : vector<8x256xf32>
    %23 = tpu.matmul %21, %22, %cst_17 {dimension_numbers = #tpu.dot_dimension_numbers<[1], [0], [0], [1], [0, 0, 1, 1], [], []>} : vector<8x4xbf16>, vector<4x256xbf16>, vector<8x256xf32> -> vector<8x256xf32>
    %24 = arith.addf %19, %23 : vector<8x256xf32>
    %c4 = arith.constant 4 : index
    %c0_18 = arith.constant 0 : index
    %c0_19 = arith.constant 0 : index
    %25 = vector.load %arg3[%c4, %c0_18, %c0_19] : memref<9x8x4xbf16, #tpu.memory_space<vmem>>, vector<1x8x4xbf16>
    %26 = vector.shape_cast %25 : vector<1x8x4xbf16> to vector<8x4xbf16>
    %27 = vector.extract_strided_slice %3 {offsets = [0, 17], sizes = [4, 256], strides = [1, 1]} : vector<4x384xbf16> to vector<4x256xbf16>
    %cst_20 = arith.constant dense<0.000000e+00> : vector<8x256xf32>
    %28 = tpu.matmul %26, %27, %cst_20 {dimension_numbers = #tpu.dot_dimension_numbers<[1], [0], [0], [1], [0, 0, 1, 1], [], []>} : vector<8x4xbf16>, vector<4x256xbf16>, vector<8x256xf32> -> vector<8x256xf32>
    %29 = arith.addf %24, %28 : vector<8x256xf32>
    %c5 = arith.constant 5 : index
    %c0_21 = arith.constant 0 : index
    %c0_22 = arith.constant 0 : index
    %30 = vector.load %arg3[%c5, %c0_21, %c0_22] : memref<9x8x4xbf16, #tpu.memory_space<vmem>>, vector<1x8x4xbf16>
    %31 = vector.shape_cast %30 : vector<1x8x4xbf16> to vector<8x4xbf16>
    %32 = vector.extract_strided_slice %3 {offsets = [0, 18], sizes = [4, 256], strides = [1, 1]} : vector<4x384xbf16> to vector<4x256xbf16>
    %cst_23 = arith.constant dense<0.000000e+00> : vector<8x256xf32>
    %33 = tpu.matmul %31, %32, %cst_23 {dimension_numbers = #tpu.dot_dimension_numbers<[1], [0], [0], [1], [0, 0, 1, 1], [], []>} : vector<8x4xbf16>, vector<4x256xbf16>, vector<8x256xf32> -> vector<8x256xf32>
    %34 = arith.addf %29, %33 : vector<8x256xf32>
    %c6 = arith.constant 6 : index
    %c0_24 = arith.constant 0 : index
    %c0_25 = arith.constant 0 : index
    %35 = vector.load %arg3[%c6, %c0_24, %c0_25] : memref<9x8x4xbf16, #tpu.memory_space<vmem>>, vector<1x8x4xbf16>
    %36 = vector.shape_cast %35 : vector<1x8x4xbf16> to vector<8x4xbf16>
    %37 = vector.extract_strided_slice %3 {offsets = [0, 32], sizes = [4, 256], strides = [1, 1]} : vector<4x384xbf16> to vector<4x256xbf16>
    %cst_26 = arith.constant dense<0.000000e+00> : vector<8x256xf32>
    %38 = tpu.matmul %36, %37, %cst_26 {dimension_numbers = #tpu.dot_dimension_numbers<[1], [0], [0], [1], [0, 0, 1, 1], [], []>} : vector<8x4xbf16>, vector<4x256xbf16>, vector<8x256xf32> -> vector<8x256xf32>
    %39 = arith.addf %34, %38 : vector<8x256xf32>
    %c7 = arith.constant 7 : index
    %c0_27 = arith.constant 0 : index
    %c0_28 = arith.constant 0 : index
    %40 = vector.load %arg3[%c7, %c0_27, %c0_28] : memref<9x8x4xbf16, #tpu.memory_space<vmem>>, vector<1x8x4xbf16>
    %41 = vector.shape_cast %40 : vector<1x8x4xbf16> to vector<8x4xbf16>
    %42 = vector.extract_strided_slice %3 {offsets = [0, 33], sizes = [4, 256], strides = [1, 1]} : vector<4x384xbf16> to vector<4x256xbf16>
    %cst_29 = arith.constant dense<0.000000e+00> : vector<8x256xf32>
    %43 = tpu.matmul %41, %42, %cst_29 {dimension_numbers = #tpu.dot_dimension_numbers<[1], [0], [0], [1], [0, 0, 1, 1], [], []>} : vector<8x4xbf16>, vector<4x256xbf16>, vector<8x256xf32> -> vector<8x256xf32>
    %44 = arith.addf %39, %43 : vector<8x256xf32>
    %c8 = arith.constant 8 : index
    %c0_30 = arith.constant 0 : index
    %c0_31 = arith.constant 0 : index
    %45 = vector.load %arg3[%c8, %c0_30, %c0_31] : memref<9x8x4xbf16, #tpu.memory_space<vmem>>, vector<1x8x4xbf16>
    %46 = vector.shape_cast %45 : vector<1x8x4xbf16> to vector<8x4xbf16>
    %47 = vector.extract_strided_slice %3 {offsets = [0, 34], sizes = [4, 256], strides = [1, 1]} : vector<4x384xbf16> to vector<4x256xbf16>
    %cst_32 = arith.constant dense<0.000000e+00> : vector<8x256xf32>
    %48 = tpu.matmul %46, %47, %cst_32 {dimension_numbers = #tpu.dot_dimension_numbers<[1], [0], [0], [1], [0, 0, 1, 1], [], []>} : vector<8x4xbf16>, vector<4x256xbf16>, vector<8x256xf32> -> vector<8x256xf32>
    %49 = arith.addf %44, %48 : vector<8x256xf32>
    %50 = vector.extract_strided_slice %0 {offsets = [0, 1, 0, 0], sizes = [1, 1, 4, 384], strides = [1, 1, 1, 1]} : vector<1x2x4x384xbf16> to vector<1x1x4x384xbf16>
    %51 = vector.shape_cast %50 : vector<1x1x4x384xbf16> to vector<4x384xbf16>
    %cst_33 = arith.constant 0.000000e+00 : f32
    %52 = vector.broadcast %cst_33 : f32 to vector<8x256xf32>
    %c0_34 = arith.constant 0 : index
    %c0_35 = arith.constant 0 : index
    %c0_36 = arith.constant 0 : index
    %53 = vector.load %arg3[%c0_34, %c0_35, %c0_36] : memref<9x8x4xbf16, #tpu.memory_space<vmem>>, vector<1x8x4xbf16>
    %54 = vector.shape_cast %53 : vector<1x8x4xbf16> to vector<8x4xbf16>
    %55 = vector.extract_strided_slice %51 {offsets = [0, 0], sizes = [4, 256], strides = [1, 1]} : vector<4x384xbf16> to vector<4x256xbf16>
    %cst_37 = arith.constant dense<0.000000e+00> : vector<8x256xf32>
    %56 = tpu.matmul %54, %55, %cst_37 {dimension_numbers = #tpu.dot_dimension_numbers<[1], [0], [0], [1], [0, 0, 1, 1], [], []>} : vector<8x4xbf16>, vector<4x256xbf16>, vector<8x256xf32> -> vector<8x256xf32>
    %57 = arith.addf %52, %56 : vector<8x256xf32>
    %c1_38 = arith.constant 1 : index
    %c0_39 = arith.constant 0 : index
    %c0_40 = arith.constant 0 : index
    %58 = vector.load %arg3[%c1_38, %c0_39, %c0_40] : memref<9x8x4xbf16, #tpu.memory_space<vmem>>, vector<1x8x4xbf16>
    %59 = vector.shape_cast %58 : vector<1x8x4xbf16> to vector<8x4xbf16>
    %60 = vector.extract_strided_slice %51 {offsets = [0, 1], sizes = [4, 256], strides = [1, 1]} : vector<4x384xbf16> to vector<4x256xbf16>
    %cst_41 = arith.constant dense<0.000000e+00> : vector<8x256xf32>
    %61 = tpu.matmul %59, %60, %cst_41 {dimension_numbers = #tpu.dot_dimension_numbers<[1], [0], [0], [1], [0, 0, 1, 1], [], []>} : vector<8x4xbf16>, vector<4x256xbf16>, vector<8x256xf32> -> vector<8x256xf32>
    %62 = arith.addf %57, %61 : vector<8x256xf32>
    %c2_42 = arith.constant 2 : index
    %c0_43 = arith.constant 0 : index
    %c0_44 = arith.constant 0 : index
    %63 = vector.load %arg3[%c2_42, %c0_43, %c0_44] : memref<9x8x4xbf16, #tpu.memory_space<vmem>>, vector<1x8x4xbf16>
    %64 = vector.shape_cast %63 : vector<1x8x4xbf16> to vector<8x4xbf16>
    %65 = vector.extract_strided_slice %51 {offsets = [0, 2], sizes = [4, 256], strides = [1, 1]} : vector<4x384xbf16> to vector<4x256xbf16>
    %cst_45 = arith.constant dense<0.000000e+00> : vector<8x256xf32>
    %66 = tpu.matmul %64, %65, %cst_45 {dimension_numbers = #tpu.dot_dimension_numbers<[1], [0], [0], [1], [0, 0, 1, 1], [], []>} : vector<8x4xbf16>, vector<4x256xbf16>, vector<8x256xf32> -> vector<8x256xf32>
    %67 = arith.addf %62, %66 : vector<8x256xf32>
    %c3_46 = arith.constant 3 : index
    %c0_47 = arith.constant 0 : index
    %c0_48 = arith.constant 0 : index
    %68 = vector.load %arg3[%c3_46, %c0_47, %c0_48] : memref<9x8x4xbf16, #tpu.memory_space<vmem>>, vector<1x8x4xbf16>
    %69 = vector.shape_cast %68 : vector<1x8x4xbf16> to vector<8x4xbf16>
    %70 = vector.extract_strided_slice %51 {offsets = [0, 16], sizes = [4, 256], strides = [1, 1]} : vector<4x384xbf16> to vector<4x256xbf16>
    %cst_49 = arith.constant dense<0.000000e+00> : vector<8x256xf32>
    %71 = tpu.matmul %69, %70, %cst_49 {dimension_numbers = #tpu.dot_dimension_numbers<[1], [0], [0], [1], [0, 0, 1, 1], [], []>} : vector<8x4xbf16>, vector<4x256xbf16>, vector<8x256xf32> -> vector<8x256xf32>
    %72 = arith.addf %67, %71 : vector<8x256xf32>
    %c4_50 = arith.constant 4 : index
    %c0_51 = arith.constant 0 : index
    %c0_52 = arith.constant 0 : index
    %73 = vector.load %arg3[%c4_50, %c0_51, %c0_52] : memref<9x8x4xbf16, #tpu.memory_space<vmem>>, vector<1x8x4xbf16>
    %74 = vector.shape_cast %73 : vector<1x8x4xbf16> to vector<8x4xbf16>
    %75 = vector.extract_strided_slice %51 {offsets = [0, 17], sizes = [4, 256], strides = [1, 1]} : vector<4x384xbf16> to vector<4x256xbf16>
    %cst_53 = arith.constant dense<0.000000e+00> : vector<8x256xf32>
    %76 = tpu.matmul %74, %75, %cst_53 {dimension_numbers = #tpu.dot_dimension_numbers<[1], [0], [0], [1], [0, 0, 1, 1], [], []>} : vector<8x4xbf16>, vector<4x256xbf16>, vector<8x256xf32> -> vector<8x256xf32>
    %77 = arith.addf %72, %76 : vector<8x256xf32>
    %c5_54 = arith.constant 5 : index
    %c0_55 = arith.constant 0 : index
    %c0_56 = arith.constant 0 : index
    %78 = vector.load %arg3[%c5_54, %c0_55, %c0_56] : memref<9x8x4xbf16, #tpu.memory_space<vmem>>, vector<1x8x4xbf16>
    %79 = vector.shape_cast %78 : vector<1x8x4xbf16> to vector<8x4xbf16>
    %80 = vector.extract_strided_slice %51 {offsets = [0, 18], sizes = [4, 256], strides = [1, 1]} : vector<4x384xbf16> to vector<4x256xbf16>
    %cst_57 = arith.constant dense<0.000000e+00> : vector<8x256xf32>
    %81 = tpu.matmul %79, %80, %cst_57 {dimension_numbers = #tpu.dot_dimension_numbers<[1], [0], [0], [1], [0, 0, 1, 1], [], []>} : vector<8x4xbf16>, vector<4x256xbf16>, vector<8x256xf32> -> vector<8x256xf32>
    %82 = arith.addf %77, %81 : vector<8x256xf32>
    %c6_58 = arith.constant 6 : index
    %c0_59 = arith.constant 0 : index
    %c0_60 = arith.constant 0 : index
    %83 = vector.load %arg3[%c6_58, %c0_59, %c0_60] : memref<9x8x4xbf16, #tpu.memory_space<vmem>>, vector<1x8x4xbf16>
    %84 = vector.shape_cast %83 : vector<1x8x4xbf16> to vector<8x4xbf16>
    %85 = vector.extract_strided_slice %51 {offsets = [0, 32], sizes = [4, 256], strides = [1, 1]} : vector<4x384xbf16> to vector<4x256xbf16>
    %cst_61 = arith.constant dense<0.000000e+00> : vector<8x256xf32>
    %86 = tpu.matmul %84, %85, %cst_61 {dimension_numbers = #tpu.dot_dimension_numbers<[1], [0], [0], [1], [0, 0, 1, 1], [], []>} : vector<8x4xbf16>, vector<4x256xbf16>, vector<8x256xf32> -> vector<8x256xf32>
    %87 = arith.addf %82, %86 : vector<8x256xf32>
    %c7_62 = arith.constant 7 : index
    %c0_63 = arith.constant 0 : index
    %c0_64 = arith.constant 0 : index
    %88 = vector.load %arg3[%c7_62, %c0_63, %c0_64] : memref<9x8x4xbf16, #tpu.memory_space<vmem>>, vector<1x8x4xbf16>
    %89 = vector.shape_cast %88 : vector<1x8x4xbf16> to vector<8x4xbf16>
    %90 = vector.extract_strided_slice %51 {offsets = [0, 33], sizes = [4, 256], strides = [1, 1]} : vector<4x384xbf16> to vector<4x256xbf16>
    %cst_65 = arith.constant dense<0.000000e+00> : vector<8x256xf32>
    %91 = tpu.matmul %89, %90, %cst_65 {dimension_numbers = #tpu.dot_dimension_numbers<[1], [0], [0], [1], [0, 0, 1, 1], [], []>} : vector<8x4xbf16>, vector<4x256xbf16>, vector<8x256xf32> -> vector<8x256xf32>
    %92 = arith.addf %87, %91 : vector<8x256xf32>
    %c8_66 = arith.constant 8 : index
    %c0_67 = arith.constant 0 : index
    %c0_68 = arith.constant 0 : index
    %93 = vector.load %arg3[%c8_66, %c0_67, %c0_68] : memref<9x8x4xbf16, #tpu.memory_space<vmem>>, vector<1x8x4xbf16>
    %94 = vector.shape_cast %93 : vector<1x8x4xbf16> to vector<8x4xbf16>
    %95 = vector.extract_strided_slice %51 {offsets = [0, 34], sizes = [4, 256], strides = [1, 1]} : vector<4x384xbf16> to vector<4x256xbf16>
    %cst_69 = arith.constant dense<0.000000e+00> : vector<8x256xf32>
    %96 = tpu.matmul %94, %95, %cst_69 {dimension_numbers = #tpu.dot_dimension_numbers<[1], [0], [0], [1], [0, 0, 1, 1], [], []>} : vector<8x4xbf16>, vector<4x256xbf16>, vector<8x256xf32> -> vector<8x256xf32>
    %97 = arith.addf %92, %96 : vector<8x256xf32>
    %c0_i32 = arith.constant 0 : i32
    %98 = arith.cmpi eq, %arg1, %c0_i32 : i32
    %c0_i32_70 = arith.constant 0 : i32
    %99 = arith.cmpi eq, %arg2, %c0_i32_70 : i32
    %100 = arith.andi %98, %99 : i1
    %101 = arith.extui %100 : i1 to i32
    %c0_i32_71 = arith.constant 0 : i32
    %102 = arith.cmpi ne, %101, %c0_i32_71 : i32
    scf.if %102 {
      %cst_78 = arith.constant 0.000000e+00 : f32
      %114 = vector.broadcast %cst_78 : f32 to vector<8x1xf32>
      %c0_79 = arith.constant 0 : index
      %c0_80 = arith.constant 0 : index
      %115 = vector.load %arg9[%c0_79, %c0_80] : memref<8x1xf32, #tpu.memory_space<vmem>>, vector<8x1xf32>
      tpu.vector_store %arg9[%c0_79, %c0_80], %114 {strides = array<i32>} : memref<8x1xf32, #tpu.memory_space<vmem>>, vector<8x1xf32>,
      %cst_81 = arith.constant 0.000000e+00 : f32
      %116 = vector.broadcast %cst_81 : f32 to vector<8x1xf32>
      %c0_82 = arith.constant 0 : index
      %c0_83 = arith.constant 0 : index
      %117 = vector.load %arg10[%c0_82, %c0_83] : memref<8x1xf32, #tpu.memory_space<vmem>>, vector<8x1xf32>
      tpu.vector_store %arg10[%c0_82, %c0_83], %116 {strides = array<i32>} : memref<8x1xf32, #tpu.memory_space<vmem>>, vector<8x1xf32>,
    } else {
    }
    %c0_i32_72 = arith.constant 0 : i32
    %103 = arith.cmpi eq, %arg1, %c0_i32_72 : i32
    %104 = arith.extui %103 : i1 to i32
    %c0_i32_73 = arith.constant 0 : i32
    %105 = arith.cmpi ne, %104, %c0_i32_73 : i32
    scf.if %105 {
      %cst_78 = arith.constant 0.000000e+00 : f32
      %114 = vector.broadcast %cst_78 : f32 to vector<8x1xf32>
      %cst_79 = arith.constant 0.000000e+00 : f32
      %115 = vector.broadcast %cst_79 : f32 to vector<8x1xf32>
      %116 = vector.broadcast %1 : vector<1x256xf32> to vector<8x256xf32>
      %117 = arith.mulf %49, %116 : vector<8x256xf32>
      %cst_80 = arith.constant dense<0.000000e+00> : vector<8xf32>
      %118 = vector.multi_reduction <add>, %117, %cst_80 [1] : vector<8x256xf32> to vector<8xf32>
      %119 = vector.shape_cast %118 : vector<8xf32> to vector<8x1xf32>
      %120 = arith.addf %114, %119 : vector<8x1xf32>
      %121 = arith.mulf %117, %49 : vector<8x256xf32>
      %cst_81 = arith.constant dense<0.000000e+00> : vector<8xf32>
      %122 = vector.multi_reduction <add>, %121, %cst_81 [1] : vector<8x256xf32> to vector<8xf32>
      %123 = vector.shape_cast %122 : vector<8xf32> to vector<8x1xf32>
      %124 = arith.addf %115, %123 : vector<8x1xf32>
      %125 = vector.broadcast %1 : vector<1x256xf32> to vector<8x256xf32>
      %126 = arith.mulf %97, %125 : vector<8x256xf32>
      %cst_82 = arith.constant dense<0.000000e+00> : vector<8xf32>
      %127 = vector.multi_reduction <add>, %126, %cst_82 [1] : vector<8x256xf32> to vector<8xf32>
      %128 = vector.shape_cast %127 : vector<8xf32> to vector<8x1xf32>
      %129 = arith.addf %120, %128 : vector<8x1xf32>
      %130 = arith.mulf %126, %97 : vector<8x256xf32>
      %cst_83 = arith.constant dense<0.000000e+00> : vector<8xf32>
      %131 = vector.multi_reduction <add>, %130, %cst_83 [1] : vector<8x256xf32> to vector<8xf32>
      %132 = vector.shape_cast %131 : vector<8xf32> to vector<8x1xf32>
      %133 = arith.addf %124, %132 : vector<8x1xf32>
      %c0_84 = arith.constant 0 : index
      %c0_85 = arith.constant 0 : index
      %134 = vector.load %arg9[%c0_84, %c0_85] : memref<8x1xf32, #tpu.memory_space<vmem>>, vector<8x1xf32>
      %135 = arith.addf %134, %129 : vector<8x1xf32>
      %c0_86 = arith.constant 0 : index
      %c0_87 = arith.constant 0 : index
      %136 = vector.load %arg9[%c0_86, %c0_87] : memref<8x1xf32, #tpu.memory_space<vmem>>, vector<8x1xf32>
      tpu.vector_store %arg9[%c0_86, %c0_87], %135 {strides = array<i32>} : memref<8x1xf32, #tpu.memory_space<vmem>>, vector<8x1xf32>,
      %c0_88 = arith.constant 0 : index
      %c0_89 = arith.constant 0 : index
      %137 = vector.load %arg10[%c0_88, %c0_89] : memref<8x1xf32, #tpu.memory_space<vmem>>, vector<8x1xf32>
      %138 = arith.addf %137, %133 : vector<8x1xf32>
      %c0_90 = arith.constant 0 : index
      %c0_91 = arith.constant 0 : index
      %139 = vector.load %arg10[%c0_90, %c0_91] : memref<8x1xf32, #tpu.memory_space<vmem>>, vector<8x1xf32>
      tpu.vector_store %arg10[%c0_90, %c0_91], %138 {strides = array<i32>} : memref<8x1xf32, #tpu.memory_space<vmem>>, vector<8x1xf32>,
    } else {
    }
    %c0_i32_74 = arith.constant 0 : i32
    %106 = arith.cmpi eq, %arg1, %c0_i32_74 : i32
    %c0_i32_75 = arith.constant 0 : i32
    %107 = arith.cmpi eq, %arg2, %c0_i32_75 : i32
    %108 = arith.andi %106, %107 : i1
    %109 = arith.extui %108 : i1 to i32
    %c0_i32_76 = arith.constant 0 : i32
    %110 = arith.cmpi ne, %109, %c0_i32_76 : i32
    scf.if %110 {
      %c0_78 = arith.constant 0 : index
      %c0_79 = arith.constant 0 : index
      %114 = vector.load %arg9[%c0_78, %c0_79] : memref<8x1xf32, #tpu.memory_space<vmem>>, vector<8x1xf32>
      %cst_80 = arith.constant 0.00255102036 : f32
      %115 = vector.broadcast %cst_80 : f32 to vector<8x1xf32>
      %116 = arith.mulf %114, %115 : vector<8x1xf32>
      %c0_81 = arith.constant 0 : index
      %c0_82 = arith.constant 0 : index
      %117 = vector.load %arg10[%c0_81, %c0_82] : memref<8x1xf32, #tpu.memory_space<vmem>>, vector<8x1xf32>
      %cst_83 = arith.constant 0.00255102036 : f32
      %118 = vector.broadcast %cst_83 : f32 to vector<8x1xf32>
      %119 = arith.mulf %117, %118 : vector<8x1xf32>
      %120 = arith.mulf %116, %116 : vector<8x1xf32>
      %121 = arith.subf %119, %120 : vector<8x1xf32>
      %cst_84 = arith.constant 9.99999974E-6 : f32
      %122 = vector.broadcast %cst_84 : f32 to vector<8x1xf32>
      %123 = arith.addf %121, %122 : vector<8x1xf32>
      %124 = math.rsqrt %123 : vector<8x1xf32>
      %c0_85 = arith.constant 0 : index
      %c0_86 = arith.constant 0 : index
      %125 = vector.load %arg6[%c0_85, %c0_86] : memref<8x1xf32, #tpu.memory_space<vmem>>, vector<8x1xf32>
      %126 = arith.mulf %125, %124 : vector<8x1xf32>
      %c0_87 = arith.constant 0 : index
      %c0_88 = arith.constant 0 : index
      %127 = vector.load %arg11[%c0_87, %c0_88] : memref<8x1xf32, #tpu.memory_space<vmem>>, vector<8x1xf32>
      tpu.vector_store %arg11[%c0_87, %c0_88], %126 {strides = array<i32>} : memref<8x1xf32, #tpu.memory_space<vmem>>, vector<8x1xf32>,
      %c0_89 = arith.constant 0 : index
      %c0_90 = arith.constant 0 : index
      %128 = vector.load %arg7[%c0_89, %c0_90] : memref<8x1xf32, #tpu.memory_space<vmem>>, vector<8x1xf32>
      %129 = arith.mulf %116, %126 : vector<8x1xf32>
      %130 = arith.subf %128, %129 : vector<8x1xf32>
      %c0_91 = arith.constant 0 : index
      %c0_92 = arith.constant 0 : index
      %131 = vector.load %arg12[%c0_91, %c0_92] : memref<8x1xf32, #tpu.memory_space<vmem>>, vector<8x1xf32>
      tpu.vector_store %arg12[%c0_91, %c0_92], %130 {strides = array<i32>} : memref<8x1xf32, #tpu.memory_space<vmem>>, vector<8x1xf32>,
    } else {
    }
    %c1_i32 = arith.constant 1 : i32
    %111 = arith.cmpi eq, %arg1, %c1_i32 : i32
    %112 = arith.extui %111 : i1 to i32
    %c0_i32_77 = arith.constant 0 : i32
    %113 = arith.cmpi ne, %112, %c0_i32_77 : i32
    scf.if %113 {
      %c0_78 = arith.constant 0 : index
      %c0_79 = arith.constant 0 : index
      %114 = vector.load %arg11[%c0_78, %c0_79] : memref<8x1xf32, #tpu.memory_space<vmem>>, vector<8x1xf32>
      %c0_80 = arith.constant 0 : index
      %c0_81 = arith.constant 0 : index
      %115 = vector.load %arg12[%c0_80, %c0_81] : memref<8x1xf32, #tpu.memory_space<vmem>>, vector<8x1xf32>
      %116 = vector.broadcast %114 : vector<8x1xf32> to vector<8x256xf32>
      %117 = arith.mulf %49, %116 : vector<8x256xf32>
      %118 = vector.broadcast %115 : vector<8x1xf32> to vector<8x256xf32>
      %119 = arith.addf %117, %118 : vector<8x256xf32>
      %cst_82 = arith.constant 2.000000e-01 : f32
      %120 = vector.broadcast %cst_82 : f32 to vector<8x256xf32>
      %121 = arith.mulf %120, %119 : vector<8x256xf32>
      %122 = arith.maximumf %119, %121 : vector<8x256xf32>
      %c0_83 = arith.constant 0 : index
      %c0_84 = arith.constant 0 : index
      %c0_85 = arith.constant 0 : index
      %123 = vector.load %arg8[%c0_83, %c0_84, %c0_85] : memref<2x8x256xf32, #tpu.memory_space<vmem>>, vector<1x8x256xf32>
      %124 = vector.shape_cast %123 : vector<1x8x256xf32> to vector<8x256xf32>
      %125 = vector.shape_cast %122 : vector<8x256xf32> to vector<1x8x256xf32>
      tpu.vector_store %arg8[%c0_83, %c0_84, %c0_85], %125 {strides = array<i32>} : memref<2x8x256xf32, #tpu.memory_space<vmem>>, vector<1x8x256xf32>,
      %126 = vector.broadcast %114 : vector<8x1xf32> to vector<8x256xf32>
      %127 = arith.mulf %97, %126 : vector<8x256xf32>
      %128 = vector.broadcast %115 : vector<8x1xf32> to vector<8x256xf32>
      %129 = arith.addf %127, %128 : vector<8x256xf32>
      %cst_86 = arith.constant 2.000000e-01 : f32
      %130 = vector.broadcast %cst_86 : f32 to vector<8x256xf32>
      %131 = arith.mulf %130, %129 : vector<8x256xf32>
      %132 = arith.maximumf %129, %131 : vector<8x256xf32>
      %c1_87 = arith.constant 1 : index
      %c0_88 = arith.constant 0 : index
      %c0_89 = arith.constant 0 : index
      %133 = vector.load %arg8[%c1_87, %c0_88, %c0_89] : memref<2x8x256xf32, #tpu.memory_space<vmem>>, vector<1x8x256xf32>
      %134 = vector.shape_cast %133 : vector<1x8x256xf32> to vector<8x256xf32>
      %135 = vector.shape_cast %132 : vector<8x256xf32> to vector<1x8x256xf32>
      tpu.vector_store %arg8[%c1_87, %c0_88, %c0_89], %135 {strides = array<i32>} : memref<2x8x256xf32, #tpu.memory_space<vmem>>, vector<1x8x256xf32>,
    } else {
    }
    return
  }
  func.func @transform_0(%arg0: i32, %arg1: i32, %arg2: i32) -> (i32, i32, i32) {
    %c0_i32 = arith.constant 0 : i32
    %c0_i32_0 = arith.constant 0 : i32
    %c0_i32_1 = arith.constant 0 : i32
    return %c0_i32, %arg0, %c0_i32_0 : i32, i32, i32
  }
  func.func @transform_1(%arg0: i32, %arg1: i32, %arg2: i32) -> (i32, i32, i32, i32) {
    %c0_i32 = arith.constant 0 : i32
    %c0_i32_0 = arith.constant 0 : i32
    %c0_i32_1 = arith.constant 0 : i32
    %c0_i32_2 = arith.constant 0 : i32
    return %arg2, %c0_i32, %c0_i32_0, %c0_i32_1 : i32, i32, i32, i32
  }
  func.func @transform_2(%arg0: i32, %arg1: i32, %arg2: i32) -> (i32, i32) {
    %c0_i32 = arith.constant 0 : i32
    %c0_i32_0 = arith.constant 0 : i32
    %c0_i32_1 = arith.constant 0 : i32
    return %c0_i32, %c0_i32_0 : i32, i32
  }
  func.func @transform_3(%arg0: i32, %arg1: i32, %arg2: i32) -> (i32, i32) {
    %c0_i32 = arith.constant 0 : i32
    %c0_i32_0 = arith.constant 0 : i32
    return %arg0, %c0_i32 : i32, i32
  }
  func.func @transform_4(%arg0: i32, %arg1: i32, %arg2: i32) -> (i32, i32) {
    %c0_i32 = arith.constant 0 : i32
    %c0_i32_0 = arith.constant 0 : i32
    return %arg0, %c0_i32 : i32, i32
  }
  func.func @transform_5(%arg0: i32, %arg1: i32, %arg2: i32) -> (i32, i32, i32) {
    %0 = arith.muli %arg2, %arg1 : i32
    %c0_i32 = arith.constant 0 : i32
    %c0_i32_0 = arith.constant 0 : i32
    return %0, %arg0, %c0_i32 : i32, i32, i32
  }
}

</mosaic_0001>

<bundles_post_ra>
// kernel: conv_block_forward.1
= control target key start
LH: loop header
LB: loop body
LE: loop exit
PB: predicated region body
PF: predicated region fallthrough
CT: control target
= control target key end

     0   :  { %s1826_s18 = smov 0   ;;  %s1828_s19 = smov 0   ;;  %s2157_s0 = inlined_call_operand.vmem [shape: bf16[9,8,4], index: 0, kind: input, shape index: {}]   ;;  %s2158_s1 = inlined_call_operand.vmem [shape: bf16[1,2,4,384], index: 1, kind: input, shape index: {}]   ;;  %s2159_s2 = inlined_call_operand.vmem [shape: f32[1,256], index: 2, kind: input, shape index: {}]   ;;  %s2160_s3 = inlined_call_operand.vmem [shape: f32[8,1], index: 3, kind: input, shape index: {}]   ;;  %s2161_s4 = inlined_call_operand.vmem [shape: f32[8,1], index: 4, kind: input, shape index: {}]   ;;  %s2162_s5 = inlined_call_operand.vmem [shape: f32[2,8,256], index: 5, kind: output, shape index: {}]  }
   0x1   :  { %s1830_s20 = smov 0  }
   0x2 LB: > { %s30_s21 = sadd.s32 1, %s1778_s19  ;;  %p1664_p0 = scmp.ge.s32.totalorder %s1782_s20, 1  ;;  %s1782_s20 = sphi %s1830_s20, %s15_s20   ;;  %s1778_s19 = sphi %s1828_s19, %s2164_s19   ;;  %s1774_s18 = sphi %s1826_s18, %s2163_s18  }
   0x3   : > { %p32_p1 = scmp.ge.s32.totalorder %s30_s21, 2  ;;  %p237_p2 = scmp.lt.s32.totalorder %s1782_s20, 3 }
   0x5   : > { %s2166_s21 = smov (%p32_p1, %s30_s21), 0  ;;  %p238_p3 = pnand %p1664_p0, %p237_p2 }
   0x6   : > { %s1786_s26 = smov (!%p238_p3), 127   ;;  %s1787_s27 = smov (!%p238_p3), 126  }
   0x7   : > { %241 = sbr.rel (%p238_p3) target bundleno = 773 (0x305), region = 40  ;;  %s1788_s30 = smov (!%p238_p3), 112  }
   0x8   : > { %s1789_s6 = smov (!%p238_p3), 111   ;;  %s1790_s7 = smov (!%p238_p3), 110  }
   0x9   : > { %s1791_s8 = smov (!%p238_p3), 96   ;;  %s1792_s9 = smov (!%p238_p3), 95  }
   0xa   : > { %s1793_s12 = smov (!%p238_p3), 94   ;;  %p1407_p4 = scmp.eq.s32.totalorder (!%p238_p3), %s1774_s18, 0 }
   0xc   : > { %v314_v0 = vld [vmem:[%s2158_s1] sm:$0x3f]  ;;  %v325_v1 = vlaneseq  ;;  %v1784_v2 = vmov 1983009808   ;;  %v1785_v9 = vmov 0   ;;  %vm350_vm0 = vcmask 1041408  }
   0xd   : > { %v323_v3 = vunpack.c.l.s4 %v1784_v2  ;;  %v1852_v4 = vld [vmem:[%s2159_s2] sm:$0x3]  ;;  %v321_v7 = vcombine.high %v314_v0, %v314_v0  ;;  %389 = vmatprep.mubr.bf16.mxu0 %v1785_v9  ;;  %439 = vmatprep.mubr.bf16.mxu1 %v1785_v9  ;;  %vm346_vm1 = vcmask 31744   ;;  %v315_v15 = vld [vmem:[%s2158_s1 + $0x6] sm:$0x3f]  ;;  %vm343_vm2 = vcmask 1039360  }
   0xe   : > { %v1854_v5 = vshrl.u32 %v325_v1, 7  ;;  %v1868_v14 = vld [vmem:[%s2157_s0] sm:$0xf]  ;;  %v890_v18 = vcombine.high %v315_v15, %v315_v15  ;;  %vm456_vm3 = vcmask 1031168   ;;  %v1949_v27 = vld [vmem:[%s2157_s0 + $0x4] sm:$0xf] }
   0xf   : > { %v324_v6 = vunpack.c.0.s8 %v323_v3  ;;  %vm519_vm4 = vcmask 916480   ;;  %v1962_v36 = vld [vmem:[%s2157_s0 + $0x8] sm:$0xf]  ;;  %vm582_vm5 = vcmask 908288   ;;  %v1972_v41 = vld [vmem:[%s2157_s0 + $0xc] sm:$0xf] }
  0x10   : > { %v1984_v47 = vld [vmem:[%s2157_s0 + $0x10] sm:$0xf]  ;;  %vm645_vm6 = vcmask 900096   ;;  %vm708_vm7 = vcmask 785408   ;;  %v1997_v55 = vld [vmem:[%s2157_s0 + $0x14] sm:$0xf] }
  0x11   : > { %v327_v8 = vsub.s32 %v324_v6, %v1854_v5  ;;  %v2008_v61 = vld [vmem:[%s2157_s0 + $0x18] sm:$0xf]  ;;  %vm771_vm8 = vcmask 777216   ;;  %vm834_vm9 = vcmask 769024   ;;  %vm1413_vm10 = vcmask (%p1407_p4), 7168  }
  0x13   : > { %v328_v10 = vrot.slane %v314_v0, %v327_v8  ;;  %v335_v11 = vrot.slane %v321_v7, %v327_v8  ;;  %v1894_v16 = vrot.slane %v315_v15, %v327_v8  ;;  %v904_v19 = vrot.slane %v890_v18, %v327_v8  ;;  %v2021_v7 = vld [vmem:[%s2157_s0 + $0x1c] sm:$0xf]  ;;  %v2032_v15 = vld [vmem:[%s2157_s0 + $0x20] sm:$0xf] }
  0x15   : > { %337 = vrot.lane.b32.xlu0 %v328_v10, %s1786_s26  ;;  %341 = vrot.lane.b32.xlu1 %v335_v11, %s1786_s26  ;;  %v336_v12 = vcombine.high %v328_v10, %v328_v10  ;;  %v402_v13 = vsel %vm350_vm0, %v328_v10, 0  ;;  %v1900_v17 = vcombine.high %v1894_v16, %v1894_v16 }
  0x17   : > { %1668 = vmatprep.subr.msk.bf16.mxu1 %vm350_vm0, %v336_v12 }
  0x18   : > { %422 = vmatpush1.bf16.msra.mxu1 %v402_v13 }
  0x19   : > { %339 = vrot.lane.b32.xlu0 %v336_v12, %s1786_s26  ;;  %450 = vrot.lane.b32.xlu1 %v328_v10, %s1787_s27 }
  0x1b   : > { %1669 = vmatmul.mubr.msk.bf16.vlgmr.msra.gmra.mxu1 %vm346_vm1, %v1868_v14 }
  0x1c   : > { %563 = vmatprep.mubr.bf16.mxu1 %v1785_v9 }
  0x1d   : > { %452 = vrot.lane.b32.xlu0 %v336_v12, %s1787_s27  ;;  %454 = vrot.lane.b32.xlu1 %v335_v11, %s1787_s27 }
  0x21   : > { %513 = vrot.lane.b32.xlu0 %v328_v10, %s1788_s30  ;;  %515 = vrot.lane.b32.xlu1 %v336_v12, %s1788_s30 }
  0x25   : > { %517 = vrot.lane.b32.xlu0 %v335_v11, %s1788_s30  ;;  %576 = vrot.lane.b32.xlu1 %v328_v10, %s1789_s6 }
  0x29   : > { %578 = vrot.lane.b32.xlu0 %v336_v12, %s1789_s6  ;;  %580 = vrot.lane.b32.xlu1 %v335_v11, %s1789_s6 }
  0x2d   : > { %639 = vrot.lane.b32.xlu0 %v328_v10, %s1790_s7  ;;  %641 = vrot.lane.b32.xlu1 %v336_v12, %s1790_s7 }
  0x31   : > { %643 = vrot.lane.b32.xlu0 %v335_v11, %s1790_s7  ;;  %702 = vrot.lane.b32.xlu1 %v328_v10, %s1791_s8 }
  0x35   : > { %704 = vrot.lane.b32.xlu0 %v336_v12, %s1791_s8  ;;  %706 = vrot.lane.b32.xlu1 %v335_v11, %s1791_s8 }
  0x39   : > { %765 = vrot.lane.b32.xlu0 %v328_v10, %s1792_s9  ;;  %767 = vrot.lane.b32.xlu1 %v336_v12, %s1792_s9 }
  0x3d   : > { %769 = vrot.lane.b32.xlu0 %v335_v11, %s1792_s9  ;;  %828 = vrot.lane.b32.xlu1 %v328_v10, %s1793_s12 }
  0x41   : > { %830 = vrot.lane.b32.xlu0 %v336_v12, %s1793_s12  ;;  %832 = vrot.lane.b32.xlu1 %v335_v11, %s1793_s12 }
  0x45   : > { %906 = vrot.lane.b32.xlu0 %v1894_v16, %s1786_s26  ;;  %908 = vrot.lane.b32.xlu1 %v1900_v17, %s1786_s26 }
  0x49   : > { %910 = vrot.lane.b32.xlu0 %v904_v19, %s1786_s26  ;;  %1008 = vrot.lane.b32.xlu1 %v1894_v16, %s1787_s27 }
  0x4d   : > { %1010 = vrot.lane.b32.xlu0 %v1900_v17, %s1787_s27  ;;  %1012 = vrot.lane.b32.xlu1 %v904_v19, %s1787_s27 }
  0x51   : > { %1065 = vrot.lane.b32.xlu0 %v1894_v16, %s1788_s30  ;;  %1067 = vrot.lane.b32.xlu1 %v1900_v17, %s1788_s30 }
  0x55   : > { %1069 = vrot.lane.b32.xlu0 %v904_v19, %s1788_s30  ;;  %1122 = vrot.lane.b32.xlu1 %v1894_v16, %s1789_s6 }
  0x59   : > { %1124 = vrot.lane.b32.xlu0 %v1900_v17, %s1789_s6  ;;  %1126 = vrot.lane.b32.xlu1 %v904_v19, %s1789_s6 }
  0x5d   : > { %1179 = vrot.lane.b32.xlu0 %v1894_v16, %s1790_s7  ;;  %1181 = vrot.lane.b32.xlu1 %v1900_v17, %s1790_s7 }
  0x61   : > { %1183 = vrot.lane.b32.xlu0 %v904_v19, %s1790_s7  ;;  %1236 = vrot.lane.b32.xlu1 %v1894_v16, %s1791_s8 }
  0x65   : > { %1238 = vrot.lane.b32.xlu0 %v1900_v17, %s1791_s8  ;;  %1240 = vrot.lane.b32.xlu1 %v904_v19, %s1791_s8 }
  0x69   : > { %1293 = vrot.lane.b32.xlu0 %v1894_v16, %s1792_s9  ;;  %1295 = vrot.lane.b32.xlu1 %v1900_v17, %s1792_s9 }
  0x6d   : > { %1297 = vrot.lane.b32.xlu0 %v904_v19, %s1792_s9  ;;  %1350 = vrot.lane.b32.xlu1 %v1894_v16, %s1793_s12 }
  0x71   : > { %1352 = vrot.lane.b32.xlu0 %v1900_v17, %s1793_s12  ;;  %1354 = vrot.lane.b32.xlu1 %v904_v19, %s1793_s12 }
  0x87   : > { %v338_v20 = vpop.permute.xlu0 %337  ;;  %v342_v21 = vpop.permute.xlu1 %341 }
  0x8b   : > { %v340_v22 = vpop.permute.xlu0 %339  ;;  %v451_v23 = vpop.permute.xlu1 %450 }
  0x8c   : > { %v345_v24 = vsel %vm343_vm2, %v340_v22, %v342_v21  ;;  %v344_v25 = vsel %vm343_vm2, %v338_v20, %v340_v22  ;;  %v962_v20 = vsel %vm350_vm0, %v1894_v16, 0 }
  0x8d   : > { %1666 = vmatprep.subr.msk.bf16.mxu0 %vm350_vm0, %v345_v24  ;;  %v352_v26 = vsel %vm350_vm0, %v344_v25, 0 }
  0x8e   : > { %372 = vmatpush1.bf16.msra.mxu0 %v352_v26 }
  0x8f   : > { %v453_v28 = vpop.permute.xlu0 %452  ;;  %v455_v29 = vpop.permute.xlu1 %454 }
  0x90   : > { %v457_v30 = vsel %vm456_vm3, %v451_v23, %v453_v28  ;;  %v458_v31 = vsel %vm456_vm3, %v453_v28, %v455_v29 }
  0x91   : > { %v463_v32 = vsel %vm350_vm0, %v457_v30, 0  ;;  %1671 = vmatprep.subr.msk.bf16.mxu0 %vm350_vm0, %v458_v31  ;;  %1667 = vmatmul.mubr.msk.bf16.vlgmr.msra.gmra.mxu0 %vm346_vm1, %v1949_v27 }
  0x92   : > { %483 = vmatpush1.bf16.msra.mxu0 %v463_v32  ;;  %500 = vmatprep.mubr.bf16.mxu0 %v1785_v9 }
  0x93   : > { %v514_v33 = vpop.permute.xlu0 %513  ;;  %v516_v34 = vpop.permute.xlu1 %515 }
  0x94   : > { %v520_v35 = vsel %vm519_vm4, %v514_v33, %v516_v34 }
  0x95   : > { %v526_v40 = vsel %vm350_vm0, %v520_v35, 0 }
  0x97   : > { %v518_v37 = vpop.permute.xlu0 %517  ;;  %v577_v38 = vpop.permute.xlu1 %576 }
  0x98   : > { %v521_v39 = vsel %vm519_vm4, %v516_v34, %v518_v37 }
  0x99   : > { %1674 = vmatprep.subr.msk.bf16.mxu1 %vm350_vm0, %v521_v39  ;;  %1672 = vmatmul.mubr.msk.bf16.vlgmr.msra.gmra.mxu0 %vm346_vm1, %v1962_v36 }
  0x9a   : > { %546 = vmatpush1.bf16.msra.mxu1 %v526_v40  ;;  %626 = vmatprep.mubr.bf16.mxu0 %v1785_v9 }
  0x9b   : > { %v579_v42 = vpop.permute.xlu0 %578  ;;  %v581_v43 = vpop.permute.xlu1 %580 }
  0x9c   : > { %v583_v44 = vsel %vm582_vm5, %v577_v38, %v579_v42  ;;  %v584_v45 = vsel %vm582_vm5, %v579_v42, %v581_v43 }
  0x9d   : > { %v589_v46 = vsel %vm350_vm0, %v583_v44, 0  ;;  %1677 = vmatprep.subr.msk.bf16.mxu0 %vm350_vm0, %v584_v45  ;;  %1675 = vmatmul.mubr.msk.bf16.vlgmr.msra.gmra.mxu1 %vm346_vm1, %v1972_v41 }
  0x9e   : > { %609 = vmatpush1.bf16.msra.mxu0 %v589_v46  ;;  %689 = vmatprep.mubr.bf16.mxu1 %v1785_v9 }
  0x9f   : > { %v640_v48 = vpop.permute.xlu0 %639  ;;  %v642_v49 = vpop.permute.xlu1 %641 }
  0xa0   : > { %v646_v50 = vsel %vm645_vm6, %v640_v48, %v642_v49 }
  0xa1   : > { %1678 = vmatmul.mubr.msk.bf16.vlgmr.msra.gmra.mxu0 %vm346_vm1, %v1984_v47  ;;  %v652_v54 = vsel %vm350_vm0, %v646_v50, 0 }
  0xa2   : > { %752 = vmatprep.mubr.bf16.mxu0 %v1785_v9 }
  0xa3   : > { %v644_v51 = vpop.permute.xlu0 %643  ;;  %v703_v52 = vpop.permute.xlu1 %702 }
  0xa4   : > { %v647_v53 = vsel %vm645_vm6, %v642_v49, %v644_v51 }
  0xa5   : > { %1680 = vmatprep.subr.msk.bf16.mxu1 %vm350_vm0, %v647_v53 }
  0xa6   : > { %672 = vmatpush1.bf16.msra.mxu1 %v652_v54 }
  0xa7   : > { %v705_v56 = vpop.permute.xlu0 %704  ;;  %v707_v57 = vpop.permute.xlu1 %706 }
  0xa8   : > { %v709_v58 = vsel %vm708_vm7, %v703_v52, %v705_v56  ;;  %v710_v59 = vsel %vm708_vm7, %v705_v56, %v707_v57 }
  0xa9   : > { %v715_v60 = vsel %vm350_vm0, %v709_v58, 0  ;;  %1683 = vmatprep.subr.msk.bf16.mxu0 %vm350_vm0, %v710_v59  ;;  %1681 = vmatmul.mubr.msk.bf16.vlgmr.msra.gmra.mxu1 %vm346_vm1, %v1997_v55 }
  0xaa   : > { %735 = vmatpush1.bf16.msra.mxu0 %v715_v60  ;;  %815 = vmatprep.mubr.bf16.mxu1 %v1785_v9 }
  0xab   : > { %v766_v62 = vpop.permute.xlu0 %765  ;;  %v768_v63 = vpop.permute.xlu1 %767 }
  0xac   : > { %v772_v0 = vsel %vm771_vm8, %v766_v62, %v768_v63 }
  0xad   : > { %1684 = vmatmul.mubr.msk.bf16.vlgmr.msra.gmra.mxu0 %vm346_vm1, %v2008_v61  ;;  %v778_v6 = vsel %vm350_vm0, %v772_v0, 0 }
  0xae   : > { %878 = vmatprep.mubr.bf16.mxu0 %v1785_v9 }
  0xaf   : > { %v770_v1 = vpop.permute.xlu0 %769  ;;  %v829_v2 = vpop.permute.xlu1 %828 }
  0xb0   : > { %v773_v3 = vsel %vm771_vm8, %v768_v63, %v770_v1 }
  0xb1   : > { %1686 = vmatprep.subr.msk.bf16.mxu1 %vm350_vm0, %v773_v3 }
  0xb2   : > { %798 = vmatpush1.bf16.msra.mxu1 %v778_v6 }
  0xb3   : > { %v831_v8 = vpop.permute.xlu0 %830  ;;  %v833_v10 = vpop.permute.xlu1 %832 }
  0xb4   : > { %v835_v11 = vsel %vm834_vm9, %v829_v2, %v831_v8  ;;  %v836_v12 = vsel %vm834_vm9, %v831_v8, %v833_v10 }
  0xb5   : > { %v841_v13 = vsel %vm350_vm0, %v835_v11, 0  ;;  %1689 = vmatprep.subr.msk.bf16.mxu0 %vm350_vm0, %v836_v12  ;;  %1687 = vmatmul.mubr.msk.bf16.vlgmr.msra.gmra.mxu1 %vm346_vm1, %v2021_v7 }
  0xb6   : > { %861 = vmatpush1.bf16.msra.mxu0 %v841_v13  ;;  %952 = vmatprep.mubr.bf16.mxu1 %v1785_v9 }
  0xb7   : > { %v907_v18 = vpop.permute.xlu0 %906  ;;  %v909_v19 = vpop.permute.xlu1 %908  ;;  %1693 = vmatprep.subr.msk.bf16.mxu0 %vm350_vm0, %v1900_v17 }
  0xb8   : > { %v912_v21 = vsel %vm343_vm2, %v907_v18, %v909_v19 }
  0xb9   : > { %1690 = vmatmul.mubr.msk.bf16.vlgmr.msra.gmra.mxu0 %vm346_vm1, %v2032_v15  ;;  %v915_v25 = vsel %vm350_vm0, %v912_v21, 0 }
  0xba   : > { %982 = vmatpush1.bf16.msra.mxu0 %v962_v20  ;;  %999 = vmatprep.mubr.bf16.mxu0 %v1785_v9 }
  0xbb   : > { %v911_v22 = vpop.permute.xlu0 %910  ;;  %v1009_v23 = vpop.permute.xlu1 %1008 }
  0xbc   : > { %v913_v24 = vsel %vm343_vm2, %v909_v19, %v911_v22 }
  0xbd   : > { %1691 = vmatprep.subr.msk.bf16.mxu1 %vm350_vm0, %v913_v24 }
  0xbe   : > { %935 = vmatpush1.bf16.msra.mxu1 %v915_v25 }
  0xbf   : > { %v1011_v17 = vpop.permute.xlu0 %1010  ;;  %v1013_v26 = vpop.permute.xlu1 %1012 }
  0xc0   : > { %v1014_v16 = vsel %vm456_vm3, %v1009_v23, %v1011_v17  ;;  %v1015_v28 = vsel %vm456_vm3, %v1011_v17, %v1013_v26 }
  0xc1   : > { %v1017_v29 = vsel %vm350_vm0, %v1014_v16, 0  ;;  %1695 = vmatprep.subr.msk.bf16.mxu1 %vm350_vm0, %v1015_v28  ;;  %1692 = vmatmul.mubr.msk.bf16.vlgmr.msra.gmra.mxu1 %vm346_vm1, %v1949_v27 }
  0xc2   : > { %1037 = vmatpush1.bf16.msra.mxu1 %v1017_v29  ;;  %1694 = vmatmul.mubr.msk.bf16.vlgmr.msra.gmra.mxu0 %vm346_vm1, %v1868_v14 }
  0xc3   : > { %v1066_v30 = vpop.permute.xlu0 %1065  ;;  %v1068_v31 = vpop.permute.xlu1 %1067  ;;  %1054 = vmatprep.mubr.bf16.mxu1 %v1785_v9  ;;  %1111 = vmatprep.mubr.bf16.mxu0 %v1785_v9 }
  0xc4   : > { %v1071_v32 = vsel %vm519_vm4, %v1066_v30, %v1068_v31 }
  0xc5   : > { %v1074_v37 = vsel %vm350_vm0, %v1071_v32, 0 }
  0xc7   : > { %v1070_v33 = vpop.permute.xlu0 %1069  ;;  %v1123_v34 = vpop.permute.xlu1 %1122 }
  0xc8   : > { %v1072_v35 = vsel %vm519_vm4, %v1068_v31, %v1070_v33 }
  0xc9   : > { %1697 = vmatprep.subr.msk.bf16.mxu0 %vm350_vm0, %v1072_v35  ;;  %1696 = vmatmul.mubr.msk.bf16.vlgmr.msra.gmra.mxu1 %vm346_vm1, %v1962_v36 }
  0xca   : > { %1094 = vmatpush1.bf16.msra.mxu0 %v1074_v37  ;;  %1168 = vmatprep.mubr.bf16.mxu1 %v1785_v9 }
  0xcb   : > { %v1125_v14 = vpop.permute.xlu0 %1124  ;;  %v1127_v27 = vpop.permute.xlu1 %1126 }
  0xcc   : > { %v1128_v38 = vsel %vm582_vm5, %v1123_v34, %v1125_v14  ;;  %v1129_v39 = vsel %vm582_vm5, %v1125_v14, %v1127_v27 }
  0xcd   : > { %v1131_v40 = vsel %vm350_vm0, %v1128_v38, 0  ;;  %1699 = vmatprep.subr.msk.bf16.mxu1 %vm350_vm0, %v1129_v39  ;;  %1698 = vmatmul.mubr.msk.bf16.vlgmr.msra.gmra.mxu0 %vm346_vm1, %v1972_v41 }
  0xce   : > { %1151 = vmatpush1.bf16.msra.mxu1 %v1131_v40  ;;  %1225 = vmatprep.mubr.bf16.mxu0 %v1785_v9 }
  0xcf   : > { %v1180_v36 = vpop.permute.xlu0 %1179  ;;  %v1182_v42 = vpop.permute.xlu1 %1181 }
  0xd0   : > { %v1185_v43 = vsel %vm645_vm6, %v1180_v36, %v1182_v42 }
  0xd1   : > { %1700 = vmatmul.mubr.msk.bf16.vlgmr.msra.gmra.mxu1 %vm346_vm1, %v1984_v47  ;;  %v1188_v48 = vsel %vm350_vm0, %v1185_v43, 0 }
  0xd2   : > { %1282 = vmatprep.mubr.bf16.mxu1 %v1785_v9 }
  0xd3   : > { %v1184_v44 = vpop.permute.xlu0 %1183  ;;  %v1237_v45 = vpop.permute.xlu1 %1236 }
  0xd4   : > { %v1186_v46 = vsel %vm645_vm6, %v1182_v42, %v1184_v44 }
  0xd5   : > { %1701 = vmatprep.subr.msk.bf16.mxu0 %vm350_vm0, %v1186_v46 }
  0xd6   : > { %1208 = vmatpush1.bf16.msra.mxu0 %v1188_v48 }
  0xd7   : > { %v1239_v41 = vpop.permute.xlu0 %1238  ;;  %v1241_v49 = vpop.permute.xlu1 %1240 }
  0xd8   : > { %v1242_v50 = vsel %vm708_vm7, %v1237_v45, %v1239_v41  ;;  %v1243_v51 = vsel %vm708_vm7, %v1239_v41, %v1241_v49 }
  0xd9   : > { %v1245_v47 = vsel %vm350_vm0, %v1242_v50, 0  ;;  %1702 = vmatmul.mubr.msk.bf16.vlgmr.msra.gmra.mxu0 %vm346_vm1, %v1997_v55  ;;  %1703 = vmatprep.subr.msk.bf16.mxu1 %vm350_vm0, %v1243_v51 }
  0xda   : > { %1265 = vmatpush1.bf16.msra.mxu1 %v1245_v47  ;;  %1339 = vmatprep.mubr.bf16.mxu0 %v1785_v9 }
  0xdb   : > { %v1294_v52 = vpop.permute.xlu0 %1293  ;;  %v1296_v53 = vpop.permute.xlu1 %1295 }
  0xdc   : > { %v441_v54 = vpop.f32.mrf.mxu1  ;;  %v1299_v56 = vsel %vm771_vm8, %v1294_v52, %v1296_v53 }
  0xdd   : > { %1704 = vmatmul.mubr.msk.bf16.vlgmr.msra.gmra.mxu1 %vm346_vm1, %v2008_v61  ;;  %v1302_v62 = vsel %vm350_vm0, %v1299_v56, 0 }
  0xde   : > { %1396 = vmatprep.mubr.bf16.mxu1 %v1785_v9  ;;  %v443_v57 = vpop.f32.mrf.mxu1 }
  0xdf   : > { %v1298_v58 = vpop.permute.xlu0 %1297  ;;  %v1351_v59 = vpop.permute.xlu1 %1350 }
  0xe0   : > { %v1300_v55 = vsel %vm771_vm8, %v1296_v53, %v1298_v58  ;;  %v445_v60 = vpop.f32.mrf.mxu1 }
  0xe1   : > { %1705 = vmatprep.subr.msk.bf16.mxu0 %vm350_vm0, %v1300_v55 }
  0xe2   : > { %1322 = vmatpush1.bf16.msra.mxu0 %v1302_v62  ;;  %v446_v63 = vpop.f32.mrf.mxu1 }
  0xe3   : > { %v1353_v0 = vpop.permute.xlu0 %1352  ;;  %v1355_v1 = vpop.permute.xlu1 %1354 }
  0xe4   : > { %v1356_v61 = vsel %vm834_vm9, %v1351_v59, %v1353_v0  ;;  %v1357_v2 = vsel %vm834_vm9, %v1353_v0, %v1355_v1 }
  0xe5   : > { %v1359_v9 = vsel %vm350_vm0, %v1356_v61, 0  ;;  %1706 = vmatmul.mubr.msk.bf16.vlgmr.msra.gmra.mxu0 %vm346_vm1, %v2021_v7  ;;  %1707 = vmatprep.subr.msk.bf16.mxu1 %vm350_vm0, %v1357_v2 }
  0xe6   : > { %1379 = vmatpush1.bf16.msra.mxu1 %v1359_v9 }
  0xe9   : > { %1708 = vmatmul.mubr.msk.bf16.vlgmr.msra.gmra.mxu1 %vm346_vm1, %v2032_v15 }
 0x151   : > { %v391_v3 = vpop.f32.mrf.mxu0 }
 0x152   : > { %v442_v10 = vadd.f32 %v441_v54, %v391_v3 }
 0x153   : > { %v393_v6 = vpop.f32.mrf.mxu0 }
 0x154   : > { %v444_v12 = vadd.f32 %v443_v57, %v393_v6 }
 0x155   : > { %v395_v8 = vpop.f32.mrf.mxu0 }
 0x157   : > { %v396_v11 = vpop.f32.mrf.mxu0 }
 0x159   : > { %v502_v13 = vpop.f32.mrf.mxu0 }
 0x15a   : > { %v509_v18 = vadd.f32 %v502_v13, %v442_v10 }
 0x15b   : > { %v504_v19 = vpop.f32.mrf.mxu0 }
 0x15c   : > { %v510_v20 = vadd.f32 %v504_v19, %v444_v12 }
 0x15d   : > { %v506_v21 = vpop.f32.mrf.mxu0  ;;  %v565_v22 = vpop.f32.mrf.mxu1 }
 0x15e   : > { %v572_v7 = vadd.f32 %v565_v22, %v509_v18 }
 0x15f   : > { %v507_v23 = vpop.f32.mrf.mxu0  ;;  %v567_v24 = vpop.f32.mrf.mxu1 }
 0x160   : > { %v573_v25 = vadd.f32 %v567_v24, %v510_v20 }
 0x161   : > { %v628_v17 = vpop.f32.mrf.mxu0  ;;  %v569_v26 = vpop.f32.mrf.mxu1 }
 0x162   : > { %v635_v15 = vadd.f32 %v628_v17, %v572_v7 }
 0x163   : > { %v630_v16 = vpop.f32.mrf.mxu0  ;;  %v570_v28 = vpop.f32.mrf.mxu1 }
 0x164   : > { %v636_v29 = vadd.f32 %v630_v16, %v573_v25 }
 0x165   : > { %v632_v30 = vpop.f32.mrf.mxu0 }
 0x167   : > { %v633_v31 = vpop.f32.mrf.mxu0 }
 0x169   : > { %v691_v32 = vpop.f32.mrf.mxu1 }
 0x16a   : > { %v698_v27 = vadd.f32 %v691_v32, %v635_v15 }
 0x16b   : > { %v693_v33 = vpop.f32.mrf.mxu1 }
 0x16c   : > { %v699_v40 = vadd.f32 %v693_v33, %v636_v29 }
 0x16d   : > { %v754_v34 = vpop.f32.mrf.mxu0  ;;  %v695_v35 = vpop.f32.mrf.mxu1 }
 0x16e   : > { %v761_v36 = vadd.f32 %v754_v34, %v698_v27 }
 0x16f   : > { %v756_v37 = vpop.f32.mrf.mxu0  ;;  %v696_v14 = vpop.f32.mrf.mxu1 }
 0x170   : > { %v762_v44 = vadd.f32 %v756_v37, %v699_v40 }
 0x171   : > { %v758_v38 = vpop.f32.mrf.mxu0 }
 0x173   : > { %v759_v39 = vpop.f32.mrf.mxu0 }
 0x175   : > { %v817_v42 = vpop.f32.mrf.mxu1 }
 0x176   : > { %v824_v45 = vadd.f32 %v817_v42, %v761_v36 }
 0x177   : > { %v819_v43 = vpop.f32.mrf.mxu1 }
 0x178   : > { %v825_v41 = vadd.f32 %v819_v43, %v762_v44 }
 0x179   : > { %v880_v46 = vpop.f32.mrf.mxu0  ;;  %v821_v48 = vpop.f32.mrf.mxu1 }
 0x17a   : > { %v2100_v49 = vadd.f32 %v880_v46, %v824_v45  ;;  %v1794_v45 = vmov (%p1407_p4), 0.0  }
 0x17b   : > { %v882_v50 = vpop.f32.mrf.mxu0  ;;  %v822_v51 = vpop.f32.mrf.mxu1  ;;  %1414 = vst.msk [vmem:[#allocation2] sm:$0xff] (%p1407_p4), %vm1413_vm10, %v1794_v45  ;;  %1415 = vst.msk [vmem:[#allocation3] sm:$0xff] (%p1407_p4), %vm1413_vm10, %v1794_v45 }
 0x17c   : > { %v2102_v47 = vadd.f32 %v882_v50, %v825_v41 }
 0x17d   : > { %v884_v52 = vpop.f32.mrf.mxu0 }
 0x17f   : > { %v885_v53 = vpop.f32.mrf.mxu0 }
 0x181   : > { %v954_v54 = vpop.f32.mrf.mxu1 }
 0x182   : > { %v1001_v56 = vpop.f32.mrf.mxu0 }
 0x183   : > { %v956_v57 = vpop.f32.mrf.mxu1  ;;  %v1002_v13 = vadd.f32 %v1001_v56, %v954_v54 }
 0x184   : > { %v1003_v58 = vpop.f32.mrf.mxu0 }
 0x185   : > { %v958_v59 = vpop.f32.mrf.mxu1  ;;  %v1004_v20 = vadd.f32 %v1003_v58, %v956_v57 }
 0x186   : > { %v1005_v55 = vpop.f32.mrf.mxu0 }
 0x187   : > { %v959_v60 = vpop.f32.mrf.mxu1 }
 0x188   : > { %v1006_v62 = vpop.f32.mrf.mxu0 }
 0x189   : > { %v1056_v63 = vpop.f32.mrf.mxu1 }
 0x18a   : > { %v1063_v21 = vadd.f32 %v1056_v63, %v1002_v13 }
 0x18b   : > { %v1058_v0 = vpop.f32.mrf.mxu1 }
 0x18c   : > { %v1064_v25 = vadd.f32 %v1058_v0, %v1004_v20 }
 0x18d   : > { %v1060_v1 = vpop.f32.mrf.mxu1  ;;  %v1113_v61 = vpop.f32.mrf.mxu0 }
 0x18e   : > { %v1120_v17 = vadd.f32 %v1113_v61, %v1063_v21 }
 0x18f   : > { %v1061_v2 = vpop.f32.mrf.mxu1  ;;  %v1115_v9 = vpop.f32.mrf.mxu0 }
 0x190   : > { %v1121_v15 = vadd.f32 %v1115_v9, %v1064_v25 }
 0x191   : > { %v1170_v3 = vpop.f32.mrf.mxu1  ;;  %v1117_v6 = vpop.f32.mrf.mxu0 }
 0x192   : > { %v1177_v16 = vadd.f32 %v1170_v3, %v1120_v17 }
 0x193   : > { %v1172_v8 = vpop.f32.mrf.mxu1  ;;  %v1118_v10 = vpop.f32.mrf.mxu0 }
 0x194   : > { %v1178_v29 = vadd.f32 %v1172_v8, %v1121_v15 }
 0x195   : > { %v1174_v11 = vpop.f32.mrf.mxu1 }
 0x197   : > { %v1175_v12 = vpop.f32.mrf.mxu1 }
 0x199   : > { %v1227_v18 = vpop.f32.mrf.mxu0 }
 0x19a   : > { %v1234_v30 = vadd.f32 %v1227_v18, %v1177_v16 }
 0x19b   : > { %v1229_v19 = vpop.f32.mrf.mxu0 }
 0x19c   : > { %v1235_v32 = vadd.f32 %v1229_v19, %v1178_v29 }
 0x19d   : > { %v1284_v22 = vpop.f32.mrf.mxu1  ;;  %v1231_v7 = vpop.f32.mrf.mxu0 }
 0x19e   : > { %v1291_v33 = vadd.f32 %v1284_v22, %v1234_v30 }
 0x19f   : > { %v1286_v23 = vpop.f32.mrf.mxu1  ;;  %v1232_v24 = vpop.f32.mrf.mxu0 }
 0x1a0   : > { %v1292_v35 = vadd.f32 %v1286_v23, %v1235_v32 }
 0x1a1   : > { %v1288_v26 = vpop.f32.mrf.mxu1 }
 0x1a3   : > { %v1289_v28 = vpop.f32.mrf.mxu1 }
 0x1a5   : > { %v1341_v31 = vpop.f32.mrf.mxu0 }
 0x1a6   : > { %v1348_v37 = vadd.f32 %v1341_v31, %v1291_v33 }
 0x1a7   : > { %v1343_v34 = vpop.f32.mrf.mxu0 }
 0x1a8   : > { %v1349_v38 = vadd.f32 %v1343_v34, %v1292_v35 }
 0x1a9   : > { %v1398_v14 = vpop.f32.mrf.mxu1  ;;  %v1345_v27 = vpop.f32.mrf.mxu0 }
 0x1aa   : > { %v2104_v39 = vadd.f32 %v1398_v14, %v1348_v37 }
 0x1ab   : > { %v1400_v40 = vpop.f32.mrf.mxu1  ;;  %v1346_v36 = vpop.f32.mrf.mxu0  ;;  %1412 = sbr.rel (!%p1407_p4) target bundleno = 432 (0x1b0), region = 44 }
 0x1ac   : > { %v2106_v42 = vadd.f32 %v1400_v40, %v1349_v38 }
 0x1ad   : > { %v1402_v43 = vpop.f32.mrf.mxu1 }
 0x1af   : > { %v1403_v44 = vpop.f32.mrf.mxu1 }
 0x1b0 PF: > { %p1710_p5 = scmp.ne.s32.totalorder %s1774_s18, 0 }
 0x1b2   : > { %1418 = sbr.rel (%p1710_p5) target bundleno = 594 (0x252), region = 48 }
 0x1b7   : > { %v1422_v46 = vsub.s32 0, %v1854_v5  ;;  %v1426_v48 = vsub.s32 1, %v1854_v5  ;;  %v1454_v63 = vld [vmem:[#allocation2] sm:$0xff]  ;;  %vm1456_vm11 = vcmask 7168   ;;  %v1458_v9 = vld [vmem:[#allocation3] sm:$0xff] }
 0x1b9   : > { %v1423_v41 = vrot.slane %v1852_v4, %v1422_v46  ;;  %v1427_v50 = vrot.slane %v1852_v4, %v1426_v48 }
 0x1bb   : > { %v1442_v51 = vmul.f32 %v1423_v41, %v2104_v39  ;;  %v1443_v52 = vmul.f32 %v1427_v50, %v2106_v42  ;;  %v1430_v53 = vmul.f32 %v1423_v41, %v2100_v49  ;;  %v1431_v54 = vmul.f32 %v1427_v50, %v2102_v47 }
 0x1bd   : > { %v1444_v56 = vadd.f32 %v1443_v52, %v1442_v51  ;;  %v1432_v57 = vadd.f32 %v1431_v54, %v1430_v53  ;;  %v1448_v58 = vmul.f32 %v1442_v51, %v2104_v39  ;;  %v1449_v59 = vmul.f32 %v1443_v52, %v2106_v42 }
 0x1be   : > { %v1436_v5 = vmul.f32 %v1430_v53, %v2100_v49  ;;  %v1437_v55 = vmul.f32 %v1431_v54, %v2102_v47 }
 0x1bf   : > { %1445 = vadd.xlane.f32.xlu1 %v1444_v56  ;;  %1433 = vadd.xlane.f32.xlu0 %v1432_v57  ;;  %v1450_v4 = vadd.f32 %v1449_v59, %v1448_v58 }
 0x1c0   : > { %v1438_v60 = vadd.f32 %v1437_v55, %v1436_v5 }
 0x1c3   : > { %1451 = vadd.xlane.f32.xlu1 %v1450_v4  ;;  %1439 = vadd.xlane.f32.xlu0 %v1438_v60 }
 0x248   : > { %v1446_v62 = vpop.xlane.xlu1 %1445  ;;  %v1434_v0 = vpop.xlane.xlu0 %1433 }
 0x249   : > { %v1447_v1 = vadd.f32 %v1446_v62, %v1434_v0 }
 0x24b   : > { %v1455_v61 = vadd.f32 %v1454_v63, %v1447_v1 }
 0x24c   : > { %v1452_v2 = vpop.xlane.xlu1 %1451  ;;  %v1440_v3 = vpop.xlane.xlu0 %1439 }
 0x24d   : > { %1457 = vst.msk [vmem:[#allocation2] sm:$0xff] %vm1456_vm11, %v1455_v61  ;;  %v1453_v6 = vadd.f32 %v1452_v2, %v1440_v3 }
 0x24f   : > { %v1459_v8 = vadd.f32 %v1458_v9, %v1453_v6 }
 0x251   : > { %1460 = vst.msk [vmem:[#allocation3] sm:$0xff] %vm1456_vm11, %v1459_v8 }
 0x252 PF: > { %1462 = sbr.rel (!%p1407_p4) target bundleno = 628 (0x274), region = 52  ;;  %v1471_v21 = vld [vmem:[%s2160_s3] sm:$0xff] (%p1407_p4)  ;;  %vm1473_vm12 = vcmask (%p1407_p4), 7168  }
 0x253   : > { %v1475_v23 = vld [vmem:[%s2161_s4] sm:$0xff] (%p1407_p4) }
 0x254   : > { %v1463_v10 = vld [vmem:[#allocation2] sm:$0xff] (%p1407_p4) }
 0x255   : > { %v1464_v12 = vmul.f32 (%p1407_p4), 0.0025510204, %v1463_v10 }
 0x257   : > { %v1467_v18 = vmul.f32 %v1464_v12, %v1464_v12 }
 0x258   : > { %v1465_v11 = vld [vmem:[#allocation3] sm:$0xff] }
 0x259   : > { %v1466_v13 = vmul.f32 0.0025510204, %v1465_v11 }
 0x25b   : > { %v1468_v19 = vsub.f32 %v1466_v13, %v1467_v18 }
 0x25d   : > { %v1469_v20 = vadd.f32 1e-05, %v1468_v19 }
 0x25f   : > { %1757 = vrsqrt.f32 %v1469_v20 }
 0x26c   : > { %v1758_v22 = vpop.eup %1757 }
 0x26d   : > { %v1472_v7 = vmul.f32 %v1758_v22, %v1471_v21 }
 0x26f   : > { %1474 = vst.msk [vmem:[#allocation4] sm:$0xff] %vm1473_vm12, %v1472_v7  ;;  %v1476_v24 = vmul.f32 %v1472_v7, %v1464_v12 }
 0x271   : > { %v1477_v25 = vsub.f32 %v1475_v23, %v1476_v24 }
 0x273   : > { %1478 = vst.msk [vmem:[#allocation5] sm:$0xff] %vm1473_vm12, %v1477_v25 }
 0x274 PF: > { %p1711_p6 = scmp.ne.s32.totalorder %s1774_s18, 1 }
 0x276   : > { %1482 = sbr.rel (%p1711_p6) target bundleno = 773 (0x305), region = 56 }
 0x27b   : > { %v1483_v17 = vld [vmem:[#allocation4] sm:$0xff]  ;;  %v1795_v26 = vmov 0   ;;  %v1484_v15 = vld [vmem:[#allocation5] sm:$0xff] }
 0x27c   : > { %1759 = vset.pattern.permute.xlu0 %v1795_v26 }
 0x27d   : > { %1487 = vperm.xlu0 %1759, %v1483_v17  }
 0x281   : > { %1494 = vperm.xlu0 %1759, %v1484_v15  }
 0x2f8   : > { %v1488_v16 = vpop.permute.xlu0 %1487 }
 0x2f9   : > { %v1490_v28 = vmul.f32 %v1488_v16, %v2100_v49  ;;  %v1491_v29 = vmul.f32 %v1488_v16, %v2102_v47  ;;  %v1505_v30 = vmul.f32 %v1488_v16, %v2104_v39  ;;  %v1506_v31 = vmul.f32 %v1488_v16, %v2106_v42 }
 0x2fc   : > { %v1495_v32 = vpop.permute.xlu0 %1494 }
 0x2fd   : > { %v1497_v33 = vadd.f32 %v1495_v32, %v1490_v28  ;;  %v1498_v34 = vadd.f32 %v1495_v32, %v1491_v29  ;;  %v1507_v35 = vadd.f32 %v1505_v30, %v1495_v32  ;;  %v1508_v37 = vadd.f32 %v1506_v31, %v1495_v32 }
 0x2ff   : > { %v1499_v14 = vmul.f32 0.2, %v1497_v33  ;;  %v1500_v27 = vmul.f32 0.2, %v1498_v34  ;;  %v1509_v38 = vmul.f32 0.2, %v1507_v35 }
 0x300   : > { %v1510_v40 = vmul.f32 0.2, %v1508_v37 }
 0x301   : > { %v1501_v36 = vmax.f32 %v1497_v33, %v1499_v14  ;;  %v1502_v43 = vmax.f32 %v1498_v34, %v1500_v27  ;;  %v1511_v44 = vmax.f32 %v1507_v35, %v1509_v38 }
 0x302   : > { %v1512_v45 = vmax.f32 %v1508_v37, %v1510_v40 }
 0x303   : > { %1503 = vst [vmem:[%s2162_s5] sm:$0xff] %v1501_v36  ;;  %1504 = vst [vmem:[%s2162_s5 + $0x8] sm:$0xff] %v1502_v43 }
 0x304   : > { %1712 = vst [vmem:[%s2162_s5 + $0x10] sm:$0xff] %v1511_v44  ;;  %1713 = vst [vmem:[%s2162_s5 + $0x18] sm:$0xff] %v1512_v45 }
 0x305 PF: > { %s15_s20 = sadd.s32 1, %s1782_s20   ;;  %s2163_s18 = smov %s1778_s19 }
 0x306   : > { %p12_p7 = scmp.ge.s32.totalorder %s15_s20, 4   ;;  %s2164_s19 = smov %s2166_s21 }
 0x308   :  { %14 = sbr.rel (!%p12_p7) target bundleno = 2 (0x2), region = 104 }

</bundles_post_ra>
